<compile_context>
chip_gen: v7x
topology: tpu7x:2x2x1
jax: 0.10.0
libtpu: 0.0.40
codegen_flags: <defaults>
</compile_context>

<pallas_src>
import functools

import jax
import jax.numpy as jnp
import numpy as np
from jax import lax
from jax.experimental import pallas as pl
from jax.experimental.pallas import tpu as pltpu


def sepconv_kernel(x_ref, p_ref, out_ref, *, H, W, B, C, Cout):
    """Depthwise 3x3 (reflect pad=1) + pointwise 1x1 for B images packed on sublanes.

    x_ref  : (1, B*C, H*W)      channels (per image) on sublanes, pixels on lanes
    p_ref  : (P_ROWS, P_COLS)   packed params:
                                  [:B*C,  0:9       ] depthwise taps (PyTorch order)
                                  [:Cout, 9:9+C     ] pointwise weights
                                  [:Cout, 9+C:9+C+1 ] bias (depthwise bias folded in)
    out_ref: (1, B*Cout, H*W)
    """
    HW = H * W
    x = x_ref[0]                          # (B*C, HW), lane-dense
    p = p_ref[...]

    wdw = p[0:B * C, 0:9]                 # (B*C, 9)
    wpw = p[0:Cout, 9:9 + C]              # (Cout, C)
    bpw = p[0:Cout, 9 + C:9 + C + 1]      # (Cout, 1)

    # Boundary masks from an in-kernel lane iota (no HBM index streams).
    idx = lax.broadcasted_iota(jnp.int32, (1, HW), 1)
    if (W & (W - 1)) == 0:
        colm = jnp.bitwise_and(idx, jnp.int32(W - 1))
    else:
        colm = jnp.remainder(idx, jnp.int32(W))
    is_col0 = colm == 0
    is_colL = colm == (W - 1)
    is_row0 = idx < W
    is_rowL = idx >= (H - 1) * W

    def rot(a, s):
        # out[pix] = a[(pix - s) mod HW]; static lane rotation on the XLU.
        return pltpu.roll(a, s % HW, 1)

    def hshift(a, dj):
        # value at pixel (i, j) becomes a[i, reflect(j + dj)]   (reflect pad = 1).
        if dj == 0:
            return a
        if dj == -1:
            return jnp.where(is_col0, rot(a, -1), rot(a, 1))
        return jnp.where(is_colL, rot(a, 1), rot(a, -1))

    def vshift(a, di):
        # value at pixel (i, j) becomes a[reflect(i + di), j].
        if di == 0:
            return a
        if di == -1:
            return jnp.where(is_row0, rot(a, -W), rot(a, W))
        return jnp.where(is_rowL, rot(a, W), rot(a, -W))

    # Depthwise 3x3 with reflect padding.  Factored form: pre-mix the three column
    # taps per row offset (VPU), then one vshift per row offset (XLU).  Exact,
    # since vshift is a data-independent lane permute/select (linear, channel-
    # independent) and thus commutes with the per-channel tap scaling.
    h_taps = {dj: hshift(x, dj) for dj in (-1, 0, 1)}
    acc = None
    for di in (-1, 0, 1):
        mix = None
        for dj in (-1, 0, 1):
            t = (di + 1) * 3 + (dj + 1)          # matches PyTorch (ki, kj) tap order
            term = h_taps[dj] * wdw[:, t:t + 1]
            mix = term if mix is None else mix + term
        mix = vshift(mix, di)
        acc = mix if acc is None else acc + mix

    # Pointwise 1x1 per packed image on the VPU: (Cout,1) weight columns times
    # (1,HW) channel rows.  (HW x C) @ (C x Cout) is far too small for the MXU.
    for b in range(B):
        ac = acc[b * C:(b + 1) * C, :]           # (C, HW)
        y = wpw[:, 0:1] * ac[0:1, :] + bpw
        for c in range(1, C):
            y = y + wpw[:, c:c + 1] * ac[c:c + 1, :]
        out_ref[0, b * Cout:(b + 1) * Cout, :] = y


def _images_per_step(batch):
    """How many images to fold onto sublanes per grid step.

    v7x has 2 TensorCores per chip: keep >= 2 'parallel' grid steps so both cores
    get an image.  v5e/v6e are single-TC: pack the whole batch into one step
    (fills all 8 sublanes and halves per-step fixed overhead).
    """
    try:
        kind = jax.devices()[0].device_kind.lower()
    except Exception:  # pragma: no cover - be conservative if the query fails
        kind = ""
    if "v7" in kind and batch >= 2:
        return 1
    return batch


def sep_conv_block(x_nchw, w_dw, b_dw, w_pw, b_pw):
    """SepConvBlock forward.  PyTorch parameter layouts:
    w_dw (C,1,3,3), b_dw (C,), w_pw (Cout,C,1,1), b_pw (Cout,).
    x_nchw (N,C,H,W) -> (N,Cout,H,W)."""
    N, C, H, W = x_nchw.shape
    Cout = w_pw.shape[0]
    KH, KW = w_dw.shape[2], w_dw.shape[3]
    if (KH, KW) != (3, 3):
        raise NotImplementedError(
            "module fixes padding=1; same-size output implies a 3x3 depthwise kernel")
    HW = H * W

    B = _images_per_step(N)
    if N % B:
        B = 1
    steps = N // B

    # Only free reshapes (row-major NCHW stays contiguous): no pad / transpose passes.
    x_flat = x_nchw.reshape(steps, B * C, HW)

    # Pack all parameters into one tiny f32 slab -> single extra DMA stream.
    wdw_k = jnp.tile(w_dw.reshape(C, KH * KW).astype(jnp.float32), (B, 1))     # (B*C, 9)
    wpw_k = w_pw[:, :, 0, 0].astype(jnp.float32)                               # (Cout, C)
    # Fold the depthwise bias through the linear pointwise conv (exact).
    bpw_k = b_pw.astype(jnp.float32) + wpw_k @ b_dw.astype(jnp.float32)        # (Cout,)
    prows = max(B * C, Cout)
    pcols = KH * KW + C + 1
    slab = jnp.zeros((prows, pcols), jnp.float32)
    slab = slab.at[0:B * C, 0:KH * KW].set(wdw_k)
    slab = slab.at[0:Cout, KH * KW:KH * KW + C].set(wpw_k)
    slab = slab.at[0:Cout, KH * KW + C].set(bpw_k)

    kern = functools.partial(sepconv_kernel, H=H, W=W, B=B, C=C, Cout=Cout)
    out_flat = pl.pallas_call(
        kern,
        out_shape=jax.ShapeDtypeStruct((steps, B * Cout, HW), jnp.float32),
        grid_spec=pltpu.PrefetchScalarGridSpec(
            num_scalar_prefetch=0,
            grid=(steps,),
            in_specs=[
                pl.BlockSpec((1, B * C, HW), lambda n: (n, 0, 0)),
                pl.BlockSpec((prows, pcols), lambda n: (0, 0)),
            ],
            out_specs=pl.BlockSpec((1, B * Cout, HW), lambda n: (n, 0, 0)),
        ),
        compiler_params=pltpu.CompilerParams(
            dimension_semantics=("parallel",)),
    )(x_flat, slab)

    # TODO(synk): for production-size images add an H-row-tiled grid axis with an
    # explicit 2-row input halo (the whole-image roll wrap-around trick only works
    # when H*W is one block) and size the tile for v7x's 64 MiB VMEM.
    return out_flat.reshape(N, Cout, H, W)


def reference_sep_conv_block(x, w_dw, b_dw, w_pw, b_pw, *, pad=1):
    """Pure-JAX reference matching PyTorch semantics."""
    C = x.shape[1]
    xpad = jnp.pad(x, ((0, 0), (0, 0), (pad, pad), (pad, pad)), mode="reflect")
    dw = lax.conv_general_dilated(
        xpad, w_dw, window_strides=(1, 1), padding="VALID",
        dimension_numbers=("NCHW", "OIHW", "NCHW"), feature_group_count=C)
    dw = dw + b_dw.reshape(1, -1, 1, 1)
    pw = lax.conv_general_dilated(
        dw, w_pw, window_strides=(1, 1), padding="VALID",
        dimension_numbers=("NCHW", "OIHW", "NCHW"))
    return pw + b_pw.reshape(1, -1, 1, 1)


if __name__ == "__main__":
    # Small shapes consistent with the module: SepConvBlock(4, 8, 3), input (2,4,16,16)
    N, C, Cout, H, W, K = 2, 4, 8, 16, 16, 3

    key = jax.random.PRNGKey(0)
    k_x, k_wd, k_bd, k_wp, k_bp = jax.random.split(key, 5)

    x = jax.random.normal(k_x, (N, C, H, W), dtype=jnp.float32)
    # Deterministic synthetic parameters (PyTorch layouts).
    w_dw = 0.1 * jax.random.normal(k_wd, (C, 1, K, K), dtype=jnp.float32)
    b_dw = 0.1 * jax.random.normal(k_bd, (C,), dtype=jnp.float32)
    w_pw = 0.1 * jax.random.normal(k_wp, (Cout, C, 1, 1), dtype=jnp.float32)
    b_pw = 0.1 * jax.random.normal(k_bp, (Cout,), dtype=jnp.float32)

    out = sep_conv_block(x, w_dw, b_dw, w_pw, b_pw)
    out = jax.block_until_ready(out)

    ref = jax.block_until_ready(reference_sep_conv_block(x, w_dw, b_dw, w_pw, b_pw))
    assert out.shape == (N, Cout, H, W)
    np.testing.assert_allclose(np.asarray(out), np.asarray(ref), rtol=1e-4, atol=1e-4)

    print("KERNEL_OK")
</pallas_src>

<mosaic_0001>
module attributes {stable_mosaic.version = 11 : i64} {
  func.func @sepconv_kernel(%arg0: i32, %arg1: memref<1x8x256xf32, #tpu.memory_space<vmem>>, %arg2: memref<8x14xf32, #tpu.memory_space<vmem>>, %arg3: memref<1x16x256xf32, #tpu.memory_space<vmem>>) attributes {dimension_semantics = [#tpu.dimension_semantics<parallel>], iteration_bounds = array<i64: 1>, scalar_prefetch = 0 : i64, scratch_operands = 0 : i64, tpu.core_type = #tpu.core_type<tc>, window_params = [{transform_indices = @transform_0, window_bounds = array<i64: 1, 8, 256>}, {pipeline_mode = #tpu.pipeline_mode<synchronous>, transform_indices = @transform_1, window_bounds = array<i64: 8, 14>}, {transform_indices = @transform_2, window_bounds = array<i64: 1, 16, 256>}]} {
    %c0 = arith.constant 0 : index
    %c0_0 = arith.constant 0 : index
    %c0_1 = arith.constant 0 : index
    %0 = vector.load %arg1[%c0, %c0_0, %c0_1] : memref<1x8x256xf32, #tpu.memory_space<vmem>>, vector<1x8x256xf32>
    %1 = vector.shape_cast %0 : vector<1x8x256xf32> to vector<8x256xf32>
    %c0_2 = arith.constant 0 : index
    %c0_3 = arith.constant 0 : index
    %2 = vector.load %arg2[%c0_2, %c0_3] : memref<8x14xf32, #tpu.memory_space<vmem>>, vector<8x14xf32>
    %3 = vector.extract_strided_slice %2 {offsets = [0, 0], sizes = [8, 9], strides = [1, 1]} : vector<8x14xf32> to vector<8x9xf32>
    %4 = vector.extract_strided_slice %2 {offsets = [0, 9], sizes = [8, 4], strides = [1, 1]} : vector<8x14xf32> to vector<8x4xf32>
    %5 = vector.extract_strided_slice %2 {offsets = [0, 13], sizes = [8, 1], strides = [1, 1]} : vector<8x14xf32> to vector<8x1xf32>
    %6 = tpu.iota {dimensions = array<i32: 1>} : vector<1x256xi32>
    %c15_i32 = arith.constant 15 : i32
    %7 = vector.broadcast %c15_i32 : i32 to vector<1x256xi32>
    %8 = arith.andi %6, %7 : vector<1x256xi32>
    %c0_i32 = arith.constant 0 : i32
    %9 = vector.broadcast %c0_i32 : i32 to vector<1x256xi32>
    %10 = arith.cmpi eq, %8, %9 : vector<1x256xi32>
    %c15_i32_4 = arith.constant 15 : i32
    %11 = vector.broadcast %c15_i32_4 : i32 to vector<1x256xi32>
    %12 = arith.cmpi eq, %8, %11 : vector<1x256xi32>
    %c16_i32 = arith.constant 16 : i32
    %13 = vector.broadcast %c16_i32 : i32 to vector<1x256xi32>
    %14 = arith.cmpi slt, %6, %13 : vector<1x256xi32>
    %c240_i32 = arith.constant 240 : i32
    %15 = vector.broadcast %c240_i32 : i32 to vector<1x256xi32>
    %16 = arith.cmpi sge, %6, %15 : vector<1x256xi32>
    %c255_i32 = arith.constant 255 : i32
    %17 = tpu.dynamic_rotate %1 by %c255_i32 dim 1 : vector<8x256xf32>, i32 -> vector<8x256xf32>
    %c1_i32 = arith.constant 1 : i32
    %18 = tpu.dynamic_rotate %1 by %c1_i32 dim 1 : vector<8x256xf32>, i32 -> vector<8x256xf32>
    %19 = vector.shape_cast %10 : vector<1x256xi1> to vector<1x256xi1>
    %20 = vector.broadcast %19 : vector<1x256xi1> to vector<8x256xi1>
    %21 = arith.select %20, %17, %18 : vector<8x256xi1>, vector<8x256xf32>
    %c1_i32_5 = arith.constant 1 : i32
    %22 = tpu.dynamic_rotate %1 by %c1_i32_5 dim 1 : vector<8x256xf32>, i32 -> vector<8x256xf32>
    %c255_i32_6 = arith.constant 255 : i32
    %23 = tpu.dynamic_rotate %1 by %c255_i32_6 dim 1 : vector<8x256xf32>, i32 -> vector<8x256xf32>
    %24 = vector.shape_cast %12 : vector<1x256xi1> to vector<1x256xi1>
    %25 = vector.broadcast %24 : vector<1x256xi1> to vector<8x256xi1>
    %26 = arith.select %25, %22, %23 : vector<8x256xi1>, vector<8x256xf32>
    %27 = vector.extract_strided_slice %3 {offsets = [0, 0], sizes = [8, 1], strides = [1, 1]} : vector<8x9xf32> to vector<8x1xf32>
    %28 = vector.broadcast %27 : vector<8x1xf32> to vector<8x256xf32>
    %29 = arith.mulf %21, %28 : vector<8x256xf32>
    %30 = vector.extract_strided_slice %3 {offsets = [0, 1], sizes = [8, 1], strides = [1, 1]} : vector<8x9xf32> to vector<8x1xf32>
    %31 = vector.broadcast %30 : vector<8x1xf32> to vector<8x256xf32>
    %32 = arith.mulf %1, %31 : vector<8x256xf32>
    %33 = arith.addf %29, %32 : vector<8x256xf32>
    %34 = vector.extract_strided_slice %3 {offsets = [0, 2], sizes = [8, 1], strides = [1, 1]} : vector<8x9xf32> to vector<8x1xf32>
    %35 = vector.broadcast %34 : vector<8x1xf32> to vector<8x256xf32>
    %36 = arith.mulf %26, %35 : vector<8x256xf32>
    %37 = arith.addf %33, %36 : vector<8x256xf32>
    %c240_i32_7 = arith.constant 240 : i32
    %38 = tpu.dynamic_rotate %37 by %c240_i32_7 dim 1 : vector<8x256xf32>, i32 -> vector<8x256xf32>
    %c16_i32_8 = arith.constant 16 : i32
    %39 = tpu.dynamic_rotate %37 by %c16_i32_8 dim 1 : vector<8x256xf32>, i32 -> vector<8x256xf32>
    %40 = vector.shape_cast %14 : vector<1x256xi1> to vector<1x256xi1>
    %41 = vector.broadcast %40 : vector<1x256xi1> to vector<8x256xi1>
    %42 = arith.select %41, %38, %39 : vector<8x256xi1>, vector<8x256xf32>
    %43 = vector.extract_strided_slice %3 {offsets = [0, 3], sizes = [8, 1], strides = [1, 1]} : vector<8x9xf32> to vector<8x1xf32>
    %44 = vector.broadcast %43 : vector<8x1xf32> to vector<8x256xf32>
    %45 = arith.mulf %21, %44 : vector<8x256xf32>
    %46 = vector.extract_strided_slice %3 {offsets = [0, 4], sizes = [8, 1], strides = [1, 1]} : vector<8x9xf32> to vector<8x1xf32>
    %47 = vector.broadcast %46 : vector<8x1xf32> to vector<8x256xf32>
    %48 = arith.mulf %1, %47 : vector<8x256xf32>
    %49 = arith.addf %45, %48 : vector<8x256xf32>
    %50 = vector.extract_strided_slice %3 {offsets = [0, 5], sizes = [8, 1], strides = [1, 1]} : vector<8x9xf32> to vector<8x1xf32>
    %51 = vector.broadcast %50 : vector<8x1xf32> to vector<8x256xf32>
    %52 = arith.mulf %26, %51 : vector<8x256xf32>
    %53 = arith.addf %49, %52 : vector<8x256xf32>
    %54 = arith.addf %42, %53 : vector<8x256xf32>
    %55 = vector.extract_strided_slice %3 {offsets = [0, 6], sizes = [8, 1], strides = [1, 1]} : vector<8x9xf32> to vector<8x1xf32>
    %56 = vector.broadcast %55 : vector<8x1xf32> to vector<8x256xf32>
    %57 = arith.mulf %21, %56 : vector<8x256xf32>
    %58 = vector.extract_strided_slice %3 {offsets = [0, 7], sizes = [8, 1], strides = [1, 1]} : vector<8x9xf32> to vector<8x1xf32>
    %59 = vector.broadcast %58 : vector<8x1xf32> to vector<8x256xf32>
    %60 = arith.mulf %1, %59 : vector<8x256xf32>
    %61 = arith.addf %57, %60 : vector<8x256xf32>
    %62 = vector.extract_strided_slice %3 {offsets = [0, 8], sizes = [8, 1], strides = [1, 1]} : vector<8x9xf32> to vector<8x1xf32>
    %63 = vector.broadcast %62 : vector<8x1xf32> to vector<8x256xf32>
    %64 = arith.mulf %26, %63 : vector<8x256xf32>
    %65 = arith.addf %61, %64 : vector<8x256xf32>
    %c16_i32_9 = arith.constant 16 : i32
    %66 = tpu.dynamic_rotate %65 by %c16_i32_9 dim 1 : vector<8x256xf32>, i32 -> vector<8x256xf32>
    %c240_i32_10 = arith.constant 240 : i32
    %67 = tpu.dynamic_rotate %65 by %c240_i32_10 dim 1 : vector<8x256xf32>, i32 -> vector<8x256xf32>
    %68 = vector.shape_cast %16 : vector<1x256xi1> to vector<1x256xi1>
    %69 = vector.broadcast %68 : vector<1x256xi1> to vector<8x256xi1>
    %70 = arith.select %69, %66, %67 : vector<8x256xi1>, vector<8x256xf32>
    %71 = arith.addf %54, %70 : vector<8x256xf32>
    %72 = vector.extract_strided_slice %71 {offsets = [0, 0], sizes = [4, 256], strides = [1, 1]} : vector<8x256xf32> to vector<4x256xf32>
    %73 = vector.extract_strided_slice %4 {offsets = [0, 0], sizes = [8, 1], strides = [1, 1]} : vector<8x4xf32> to vector<8x1xf32>
    %74 = vector.extract_strided_slice %72 {offsets = [0, 0], sizes = [1, 256], strides = [1, 1]} : vector<4x256xf32> to vector<1x256xf32>
    %75 = vector.broadcast %73 : vector<8x1xf32> to vector<8x256xf32>
    %76 = vector.broadcast %74 : vector<1x256xf32> to vector<8x256xf32>
    %77 = arith.mulf %75, %76 : vector<8x256xf32>
    %78 = vector.broadcast %5 : vector<8x1xf32> to vector<8x256xf32>
    %79 = arith.addf %77, %78 : vector<8x256xf32>
    %80 = vector.extract_strided_slice %4 {offsets = [0, 1], sizes = [8, 1], strides = [1, 1]} : vector<8x4xf32> to vector<8x1xf32>
    %81 = vector.extract_strided_slice %72 {offsets = [1, 0], sizes = [1, 256], strides = [1, 1]} : vector<4x256xf32> to vector<1x256xf32>
    %82 = vector.broadcast %80 : vector<8x1xf32> to vector<8x256xf32>
    %83 = vector.broadcast %81 : vector<1x256xf32> to vector<8x256xf32>
    %84 = arith.mulf %82, %83 : vector<8x256xf32>
    %85 = arith.addf %79, %84 : vector<8x256xf32>
    %86 = vector.extract_strided_slice %4 {offsets = [0, 2], sizes = [8, 1], strides = [1, 1]} : vector<8x4xf32> to vector<8x1xf32>
    %87 = vector.extract_strided_slice %72 {offsets = [2, 0], sizes = [1, 256], strides = [1, 1]} : vector<4x256xf32> to vector<1x256xf32>
    %88 = vector.broadcast %86 : vector<8x1xf32> to vector<8x256xf32>
    %89 = vector.broadcast %87 : vector<1x256xf32> to vector<8x256xf32>
    %90 = arith.mulf %88, %89 : vector<8x256xf32>
    %91 = arith.addf %85, %90 : vector<8x256xf32>
    %92 = vector.extract_strided_slice %4 {offsets = [0, 3], sizes = [8, 1], strides = [1, 1]} : vector<8x4xf32> to vector<8x1xf32>
    %93 = vector.extract_strided_slice %72 {offsets = [3, 0], sizes = [1, 256], strides = [1, 1]} : vector<4x256xf32> to vector<1x256xf32>
    %94 = vector.broadcast %92 : vector<8x1xf32> to vector<8x256xf32>
    %95 = vector.broadcast %93 : vector<1x256xf32> to vector<8x256xf32>
    %96 = arith.mulf %94, %95 : vector<8x256xf32>
    %97 = arith.addf %91, %96 : vector<8x256xf32>
    %c0_11 = arith.constant 0 : index
    %c0_12 = arith.constant 0 : index
    %c0_13 = arith.constant 0 : index
    %98 = vector.load %arg3[%c0_11, %c0_12, %c0_13] : memref<1x16x256xf32, #tpu.memory_space<vmem>>, vector<1x8x256xf32>
    %99 = vector.shape_cast %98 : vector<1x8x256xf32> to vector<8x256xf32>
    %100 = vector.shape_cast %97 : vector<8x256xf32> to vector<1x8x256xf32>
    tpu.vector_store %arg3[%c0_11, %c0_12, %c0_13], %100 {strides = array<i32>} : memref<1x16x256xf32, #tpu.memory_space<vmem>>, vector<1x8x256xf32>,
    %101 = vector.extract_strided_slice %71 {offsets = [4, 0], sizes = [4, 256], strides = [1, 1]} : vector<8x256xf32> to vector<4x256xf32>
    %102 = vector.extract_strided_slice %4 {offsets = [0, 0], sizes = [8, 1], strides = [1, 1]} : vector<8x4xf32> to vector<8x1xf32>
    %103 = vector.extract_strided_slice %101 {offsets = [0, 0], sizes = [1, 256], strides = [1, 1]} : vector<4x256xf32> to vector<1x256xf32>
    %104 = vector.broadcast %102 : vector<8x1xf32> to vector<8x256xf32>
    %105 = vector.broadcast %103 : vector<1x256xf32> to vector<8x256xf32>
    %106 = arith.mulf %104, %105 : vector<8x256xf32>
    %107 = vector.broadcast %5 : vector<8x1xf32> to vector<8x256xf32>
    %108 = arith.addf %106, %107 : vector<8x256xf32>
    %109 = vector.extract_strided_slice %4 {offsets = [0, 1], sizes = [8, 1], strides = [1, 1]} : vector<8x4xf32> to vector<8x1xf32>
    %110 = vector.extract_strided_slice %101 {offsets = [1, 0], sizes = [1, 256], strides = [1, 1]} : vector<4x256xf32> to vector<1x256xf32>
    %111 = vector.broadcast %109 : vector<8x1xf32> to vector<8x256xf32>
    %112 = vector.broadcast %110 : vector<1x256xf32> to vector<8x256xf32>
    %113 = arith.mulf %111, %112 : vector<8x256xf32>
    %114 = arith.addf %108, %113 : vector<8x256xf32>
    %115 = vector.extract_strided_slice %4 {offsets = [0, 2], sizes = [8, 1], strides = [1, 1]} : vector<8x4xf32> to vector<8x1xf32>
    %116 = vector.extract_strided_slice %101 {offsets = [2, 0], sizes = [1, 256], strides = [1, 1]} : vector<4x256xf32> to vector<1x256xf32>
    %117 = vector.broadcast %115 : vector<8x1xf32> to vector<8x256xf32>
    %118 = vector.broadcast %116 : vector<1x256xf32> to vector<8x256xf32>
    %119 = arith.mulf %117, %118 : vector<8x256xf32>
    %120 = arith.addf %114, %119 : vector<8x256xf32>
    %121 = vector.extract_strided_slice %4 {offsets = [0, 3], sizes = [8, 1], strides = [1, 1]} : vector<8x4xf32> to vector<8x1xf32>
    %122 = vector.extract_strided_slice %101 {offsets = [3, 0], sizes = [1, 256], strides = [1, 1]} : vector<4x256xf32> to vector<1x256xf32>
    %123 = vector.broadcast %121 : vector<8x1xf32> to vector<8x256xf32>
    %124 = vector.broadcast %122 : vector<1x256xf32> to vector<8x256xf32>
    %125 = arith.mulf %123, %124 : vector<8x256xf32>
    %126 = arith.addf %120, %125 : vector<8x256xf32>
    %c0_14 = arith.constant 0 : index
    %c8 = arith.constant 8 : index
    %c0_15 = arith.constant 0 : index
    %127 = vector.load %arg3[%c0_14, %c8, %c0_15] : memref<1x16x256xf32, #tpu.memory_space<vmem>>, vector<1x8x256xf32>
    %128 = vector.shape_cast %127 : vector<1x8x256xf32> to vector<8x256xf32>
    %129 = vector.shape_cast %126 : vector<8x256xf32> to vector<1x8x256xf32>
    tpu.vector_store %arg3[%c0_14, %c8, %c0_15], %129 {strides = array<i32>} : memref<1x16x256xf32, #tpu.memory_space<vmem>>, vector<1x8x256xf32>,
    return
  }
  func.func @transform_0(%arg0: i32) -> (i32, i32, i32) {
    %c0_i32 = arith.constant 0 : i32
    %c0_i32_0 = arith.constant 0 : i32
    %c0_i32_1 = arith.constant 0 : i32
    return %arg0, %c0_i32, %c0_i32_0 : i32, i32, i32
  }
  func.func @transform_1(%arg0: i32) -> (i32, i32) {
    %c0_i32 = arith.constant 0 : i32
    %c0_i32_0 = arith.constant 0 : i32
    %c0_i32_1 = arith.constant 0 : i32
    return %c0_i32, %c0_i32_0 : i32, i32
  }
  func.func @transform_2(%arg0: i32) -> (i32, i32, i32) {
    %c0_i32 = arith.constant 0 : i32
    %c0_i32_0 = arith.constant 0 : i32
    %c0_i32_1 = arith.constant 0 : i32
    return %arg0, %c0_i32, %c0_i32_0 : i32, i32, i32
  }
}

</mosaic_0001>

<bundles_post_ra>
// kernel: tpu_custom_call.1
= control target key start
LH: loop header
LB: loop body
LE: loop exit
PB: predicated region body
PF: predicated region fallthrough
CT: control target
= control target key end

     0   :  { %7 = vsyncpa [#allocation3], 0  ;;  %s578_s0 = inlined_call_operand.hbm [shape: f32[1,8,256], index: 0, kind: input, shape index: {}]   ;;  %s579_s1 = inlined_call_operand.hbm [shape: f32[8,14], index: 1, kind: input, shape index: {}]   ;;  %s580_s2 = inlined_call_operand.hbm [shape: f32[1,16,256], index: 2, kind: output, shape index: {}]  }
   0x1   :  { %8 = vsyncpa [#allocation6], 0 }
   0x2   :  { %9 = vsyncpa [#allocation4], 0  ;;  %s432_s9 = smov [#allocation2]   ;;  %s433_s11 = smov [#allocation5]  }
   0x3   :  { %s16_s10 = sshll.u32 %s432_s9, 4  ;;  %s26_s12 = sshll.u32 %s433_s11, 4  ;;  %s17_s10 = int_to_ptr.vmem [resolvable:$true] %s16_s10  ;;  %s27_s12 = int_to_ptr.vmem [resolvable:$true] %s26_s12 }
   0x4   :  { %s360_s15 = scalar_lea.hbm %s578_s0, 256 }
   0x5   :  { %p361_p0 = scmp.ne.s32.totalorder %s578_s0, %s360_s15  ;;  %p364_p1 = scmp.lt.u32.totalorder %s360_s15, %s578_s0 }
   0x7   :  { %p366_p2 = pnand %p364_p1, %p361_p0 }
   0x9   :  { %369 = shalt.err (!%p366_p2)
}
   0xa   :  { %s370_s20 = scalar_lea.vmem %s17_s10, 256  ;;  %p375_p4 = scmp.lt.s32.totalorder %s17_s10, %s17_s10 }
   0xb   :  { %p371_p3 = scmp.ne.s32.totalorder %s17_s10, %s370_s20  ;;  %p376_p5 = scmp.lt.s32.totalorder %s370_s20, %s370_s20 }
   0xd   :  { %p377_p6 = por %p376_p5, %p375_p4 }
   0xf   :  { %p378_p7 = pnand %p377_p6, %p371_p3 }
  0x11   :  { %381 = shalt.err (!%p378_p7)
}
  0x12   :  { %19 = dma.hbm_to_vmem [thread:$0]  %s578_s0, 256, %s17_s10, [#allocation3]  }
  0x13   :  { %s382_s25 = scalar_lea.hbm %s579_s1, 128 }
  0x14   :  { %p383_p8 = scmp.ne.s32.totalorder %s579_s1, %s382_s25  ;;  %p386_p9 = scmp.lt.u32.totalorder %s382_s25, %s579_s1 }
  0x16   :  { %p388_p10 = pnand %p386_p9, %p383_p8 }
  0x18   :  { %391 = shalt.err (!%p388_p10)
}
  0x19   :  { %s392_s30 = scalar_lea.vmem %s27_s12, 128  ;;  %p397_p12 = scmp.lt.s32.totalorder %s27_s12, %s27_s12 }
  0x1a   :  { %p393_p11 = scmp.ne.s32.totalorder %s27_s12, %s392_s30  ;;  %p398_p13 = scmp.lt.s32.totalorder %s392_s30, %s392_s30 }
  0x1c   :  { %p399_p0 = por %p398_p13, %p397_p12 }
  0x1e   :  { %p400_p1 = pnand %p399_p0, %p393_p11 }
  0x20   :  { %403 = shalt.err (!%p400_p1)
}
  0x21   :  { %29 = dma.hbm_to_vmem [thread:$0]  %s579_s1, 128, %s27_s12, [#allocation6]  }
  0x22   :  { %426 = dma.done.wait [#allocation3], 256  }
  0x23   :  { %427 = vsyncadd [#allocation3], 4294967040 }
  0x24   :  { %428 = dma.done.wait [#allocation6], 128  }
  0x25   :  { %429 = vsyncadd [#allocation6], 4294967168  ;;  %v434_v0 = vmov 2   ;;  %v435_v1 = vmov 0   ;;  %v493_v2 = vld [vmem:[#allocation5] sm:$0xff]  ;;  %v436_v3 = vmov 6   ;;  %v39_v18 = vlaneseq }
  0x26   :  { %348 = vset.pattern.permute.xlu1 %v434_v0  ;;  %346 = vset.pattern.permute.xlu0 %v435_v1  ;;  %v437_v4 = vmov 1   ;;  %v438_v5 = vmov 7   ;;  %v439_v6 = vmov 8   ;;  %v501_v7 = vld [vmem:[#allocation2] sm:$0xff]  ;;  %s440_s1 = smov 127   ;;  %s441_s4 = smov 1  }
  0x27   :  { %94 = vperm.xlu1 %348, %v493_v2   ;;  %80 = vperm.xlu0 %346, %v493_v2   ;;  %v505_v8 = vld [vmem:[#allocation2 + $0x8] sm:$0xff]  ;;  %v442_v9 = vmov 3   ;;  %v443_v10 = vmov 4   ;;  %v444_v11 = vmov 9   ;;  %v445_v12 = vmov 5   ;;  %s448_s5 = smov 112  }
  0x28   :  { %v446_v13 = vmov 10   ;;  %v447_v14 = vmov 13   ;;  %v514_v20 = vand.u32 127, %v39_v18  ;;  %s449_s6 = smov 16   ;;  %s452_s7 = smov [#allocation7]  }
  0x29   :  { %s311_s8 = sshll.u32 %s452_s7, 4  ;;  %s312_s8 = int_to_ptr.vmem [resolvable:$true] %s311_s8 }
  0x2a   :  { %v517_v22 = vadd.s32 128, %v514_v20  ;;  %v42_v26 = vand.u32 15, %v514_v20  ;;  %vm56_vm0 = vcmp.lt.s32.totalorder %v514_v20, 127  ;;  %vm63_vm1 = vcmp.lt.s32.totalorder %v514_v20, 1  ;;  %s404_s9 = scalar_lea.vmem %s312_s8, 512  ;;  %p409_p3 = scmp.lt.s32.totalorder %s312_s8, %s312_s8 }
  0x2b   :  { %349 = vset.pattern.permute.xlu1 %v436_v3  ;;  %347 = vset.pattern.permute.xlu0 %v437_v4  ;;  %vm48_vm6 = vcmp.lt.s32.totalorder %v514_v20, 16  ;;  %vm105_vm7 = vcmp.lt.s32.totalorder %v514_v20, 112  ;;  %p405_p2 = scmp.ne.s32.totalorder %s312_s8, %s404_s9  ;;  %p410_p4 = scmp.lt.s32.totalorder %s404_s9, %s404_s9 }
  0x2c   :  { %145 = vperm.xlu1 %349, %v493_v2   ;;  %86 = vperm.xlu0 %347, %v493_v2   ;;  %v43_v25 = vand.u32 15, %v517_v22  ;;  %vm44_vm3 = vcmp.eq.s32.totalorder %v42_v26, 0  ;;  %vm46_vm5 = vcmp.eq.s32.totalorder %v42_v26, 15  ;;  %vm51_vm8 = vcmp.ge.s32.totalorder %v517_v22, 240 }
  0x2d   :  { %p411_p5 = por %p410_p4, %p409_p3 }
  0x2e   :  { %vm47_vm2 = vcmp.eq.s32.totalorder %v43_v25, 15  ;;  %vm45_vm4 = vcmp.eq.s32.totalorder %v43_v25, 0 }
  0x2f   :  { %p412_p6 = pnand %p411_p5, %p405_p2 }
  0x30   :  { %350 = vset.pattern.permute.xlu1 %v438_v5  ;;  %351 = vset.pattern.permute.xlu0 %v439_v6 }
  0x31   :  { %151 = vperm.xlu1 %350, %v493_v2   ;;  %159 = vperm.xlu0 %351, %v493_v2  }
  0x35   :  { %52 = vrot.lane.b32.xlu1 %v501_v7, %s440_s1  ;;  %59 = vrot.lane.b32.xlu0 %v501_v7, %s441_s4 }
  0x36   :  { %352 = vset.pattern.permute.xlu0 %v442_v9  ;;  %353 = vset.pattern.permute.xlu1 %v443_v10  ;;  %v451_v9 = vmov 11  }
  0x39   :  { %54 = vrot.lane.b32.xlu1 %v505_v8, %s440_s1  ;;  %121 = vperm.xlu0 %352, %v493_v2  }
  0x3d   :  { %61 = vrot.lane.b32.xlu1 %v505_v8, %s441_s4  ;;  %355 = vset.pattern.permute.xlu0 %v444_v11 }
  0x3e   :  { %187 = vperm.xlu0 %355, %v493_v2  }
  0x41   :  { %127 = vperm.xlu1 %353, %v493_v2  }
  0x42   :  { %356 = vset.pattern.permute.xlu0 %v447_v14 }
  0x45   :  { %354 = vset.pattern.permute.xlu1 %v445_v12 }
  0x46   :  { %135 = vperm.xlu1 %354, %v493_v2  }
  0x4a   :  { %357 = vset.pattern.permute.xlu1 %v446_v13 }
  0xa6   :  { %v95_v15 = vpop.permute.xlu1 %94  ;;  %v81_v16 = vpop.permute.xlu0 %80 }
  0xab   :  { %v146_v17 = vpop.permute.xlu1 %145  ;;  %v87_v19 = vpop.permute.xlu0 %86 }
  0xac   :  { %v89_v38 = vmul.f32 %v87_v19, %v501_v7  ;;  %v90_v39 = vmul.f32 %v87_v19, %v505_v8  ;;  %v542_v19 = vshrl.u32 %v39_v18, 7 }
  0xae   :  { %v192_v25 = vsub.s32 0, %v542_v19  ;;  %v258_v18 = vsub.s32 4, %v542_v19 }
  0xb0   :  { %v152_v21 = vpop.permute.xlu1 %151  ;;  %v160_v24 = vpop.permute.xlu0 %159 }
  0xb1   :  { %v154_v55 = vmul.f32 %v152_v21, %v501_v7  ;;  %v155_v1 = vmul.f32 %v152_v21, %v505_v8 }
  0xb4   :  { %v53_v23 = vpop.permute.xlu1 %52  ;;  %v60_v28 = vpop.permute.xlu0 %59 }
  0xb8   :  { %v55_v27 = vpop.permute.xlu1 %54  ;;  %v122_v43 = vpop.permute.xlu0 %121 }
  0xb9   :  { %v57_v30 = vsel %vm56_vm0, %v53_v23, %v55_v27  ;;  %v58_v31 = vsel %vm56_vm0, %v55_v27, %v53_v23 }
  0xbc   :  { %v62_v29 = vpop.permute.xlu1 %61 }
  0xbd   :  { %v64_v32 = vsel %vm63_vm1, %v60_v28, %v62_v29  ;;  %v65_v33 = vsel %vm63_vm1, %v62_v29, %v60_v28  ;;  %v188_v11 = vpop.permute.xlu0 %187  ;;  %v212_v29 = vsub.s32 1, %v542_v19 }
  0xbe   :  { %v77_v34 = vsel %vm47_vm2, %v64_v32, %v58_v31  ;;  %v70_v35 = vsel %vm44_vm3, %v57_v30, %v65_v33  ;;  %v71_v36 = vsel %vm45_vm4, %v58_v31, %v64_v32  ;;  %v76_v37 = vsel %vm46_vm5, %v65_v33, %v57_v30 }
  0xbf   :  { %v83_v40 = vmul.f32 %v81_v16, %v70_v35  ;;  %v84_v41 = vmul.f32 %v81_v16, %v71_v36  ;;  %v98_v45 = vmul.f32 %v95_v15, %v77_v34  ;;  %v97_v47 = vmul.f32 %v95_v15, %v76_v37 }
  0xc0   :  { %v128_v42 = vpop.permute.xlu1 %127  ;;  %v148_v50 = vmul.f32 %v146_v17, %v70_v35  ;;  %v124_v53 = vmul.f32 %v122_v43, %v70_v35  ;;  %v125_v54 = vmul.f32 %v122_v43, %v71_v36  ;;  %v149_v61 = vmul.f32 %v146_v17, %v71_v36 }
  0xc1   :  { %v92_v44 = vadd.f32 %v90_v39, %v84_v41  ;;  %v91_v46 = vadd.f32 %v89_v38, %v83_v40  ;;  %v130_v48 = vmul.f32 %v128_v42, %v501_v7  ;;  %v131_v49 = vmul.f32 %v128_v42, %v505_v8 }
  0xc2   :  { %v156_v62 = vadd.f32 %v154_v55, %v148_v50  ;;  %v162_v3 = vmul.f32 %v160_v24, %v76_v37  ;;  %v157_v5 = vadd.f32 %v155_v1, %v149_v61  ;;  %v163_v6 = vmul.f32 %v160_v24, %v77_v34 }
  0xc3   :  { %v100_v51 = vadd.f32 %v98_v45, %v92_v44  ;;  %v99_v52 = vadd.f32 %v97_v47, %v91_v46  ;;  %v132_v57 = vadd.f32 %v130_v48, %v124_v53  ;;  %v133_v58 = vadd.f32 %v131_v49, %v125_v54 }
  0xc4   :  { %v164_v4 = vadd.f32 %v162_v3, %v156_v62  ;;  %v165_v7 = vadd.f32 %v163_v6, %v157_v5  ;;  %v450_v8 = vmov 12   ;;  %v228_v30 = vsub.s32 2, %v542_v19 }
  0xc5   :  { %103 = vrot.lane.b32.xlu1 %v100_v51, %s448_s5  ;;  %v136_v56 = vpop.permute.xlu1 %135  ;;  %101 = vrot.lane.b32.xlu0 %v99_v52, %s448_s5  ;;  %v270_v36 = vsub.s32 5, %v542_v19  ;;  %v282_v38 = vsub.s32 6, %v542_v19  ;;  %v244_v39 = vsub.s32 3, %v542_v19  ;;  %v294_v40 = vsub.s32 7, %v542_v19 }
  0xc6   :  { %v138_v59 = vmul.f32 %v136_v56, %v76_v37  ;;  %v139_v60 = vmul.f32 %v136_v56, %v77_v34 }
  0xc8   :  { %v140_v63 = vadd.f32 %v138_v59, %v132_v57  ;;  %v141_v0 = vadd.f32 %v139_v60, %v133_v58 }
  0xc9   :  { %110 = vrot.lane.b32.xlu1 %v100_v51, %s449_s6  ;;  %108 = vrot.lane.b32.xlu0 %v99_v52, %s449_s6 }
  0xcd   :  { %166 = vrot.lane.b32.xlu1 %v164_v4, %s449_s6  ;;  %172 = vrot.lane.b32.xlu0 %v164_v4, %s448_s5 }
  0xd1   :  { %168 = vrot.lane.b32.xlu1 %v165_v7, %s449_s6  ;;  %201 = vperm.xlu0 %356, %v493_v2  }
  0xd5   :  { %207 = vperm.xlu1 %357, %v493_v2   ;;  %359 = vset.pattern.permute.xlu0 %v450_v8 }
  0xd6   :  { %239 = vperm.xlu0 %359, %v493_v2  }
  0xd9   :  { %174 = vrot.lane.b32.xlu1 %v165_v7, %s448_s5 }
  0xda   :  { %358 = vset.pattern.permute.xlu1 %v451_v9 }
  0xdd   :  { %223 = vperm.xlu1 %358, %v493_v2  }
 0x137   :  { %v104_v10 = vpop.permute.xlu1 %103  ;;  %v102_v13 = vpop.permute.xlu0 %101 }
 0x138   :  { %v106_v2 = vsel %vm105_vm7, %v102_v13, %v104_v10 }
 0x13b   :  { %v111_v12 = vpop.permute.xlu1 %110  ;;  %v109_v15 = vpop.permute.xlu0 %108 }
 0x13c   :  { %v113_v17 = vsel %vm48_vm6, %v111_v12, %v109_v15  ;;  %v112_v24 = vsel %vm48_vm6, %v109_v15, %v111_v12 }
 0x13d   :  { %v118_v23 = vsel %vm48_vm6, %v106_v2, %v113_v17  ;;  %v143_v31 = vadd.f32 %v141_v0, %v112_v24 }
 0x13e   :  { %v142_v28 = vadd.f32 %v140_v63, %v118_v23 }
 0x13f   :  { %v167_v14 = vpop.permute.xlu1 %166  ;;  %v173_v26 = vpop.permute.xlu0 %172 }
 0x143   :  { %v169_v16 = vpop.permute.xlu1 %168 }
 0x144   :  { %v170_v32 = vsel %vm48_vm6, %v167_v14, %v169_v16 }
 0x150   :  { %v202_v43 = vpop.permute.xlu0 %201 }
 0x154   :  { %v208_v21 = vpop.permute.xlu1 %207 }
 0x155   :  { %v240_v7 = vpop.permute.xlu0 %239 }
 0x158   :  { %v175_v27 = vpop.permute.xlu1 %174 }
 0x159   :  { %v176_v33 = vsel %vm105_vm7, %v173_v26, %v175_v27  ;;  %v177_v22 = vsel %vm105_vm7, %v175_v27, %v173_v26 }
 0x15a   :  { %v183_v34 = vsel %vm51_vm8, %v170_v32, %v177_v22  ;;  %v184_v35 = vadd.f32 %v176_v33, %v142_v28 }
 0x15b   :  { %v185_v37 = vadd.f32 %v183_v34, %v143_v31 }
 0x15c   :  { %v193_v41 = vrot.slane %v184_v35, %v192_v25  ;;  %v259_v42 = vrot.slane %v184_v35, %v258_v18  ;;  %v224_v44 = vpop.permute.xlu1 %223  ;;  %v213_v45 = vrot.slane %v184_v35, %v212_v29  ;;  %v229_v46 = vrot.slane %v184_v35, %v228_v30 }
 0x15d   :  { %v197_v47 = vrot.slane %v185_v37, %v192_v25  ;;  %v263_v20 = vrot.slane %v185_v37, %v258_v18  ;;  %v217_v48 = vrot.slane %v185_v37, %v212_v29  ;;  %v233_v49 = vrot.slane %v185_v37, %v228_v30 }
 0x15e   :  { %v198_v50 = vmul.f32 %v193_v41, %v188_v11  ;;  %v264_v51 = vmul.f32 %v259_v42, %v188_v11  ;;  %v218_v52 = vmul.f32 %v213_v45, %v208_v21  ;;  %v234_v53 = vmul.f32 %v229_v46, %v224_v44 }
 0x15f   :  { %v199_v54 = vmul.f32 %v197_v47, %v188_v11  ;;  %v265_v55 = vmul.f32 %v263_v20, %v188_v11  ;;  %v219_v56 = vmul.f32 %v217_v48, %v208_v21  ;;  %v235_v57 = vmul.f32 %v233_v49, %v224_v44 }
 0x160   :  { %v204_v58 = vadd.f32 %v202_v43, %v198_v50  ;;  %v266_v59 = vadd.f32 %v264_v51, %v202_v43  ;;  %v271_v60 = vrot.slane %v184_v35, %v270_v36  ;;  %v275_v61 = vrot.slane %v185_v37, %v270_v36 }
 0x161   :  { %v205_v62 = vadd.f32 %v202_v43, %v199_v54  ;;  %v267_v63 = vadd.f32 %v265_v55, %v202_v43  ;;  %v283_v0 = vrot.slane %v184_v35, %v282_v38  ;;  %v287_v1 = vrot.slane %v185_v37, %v282_v38 }
 0x162   :  { %v220_v3 = vadd.f32 %v218_v52, %v204_v58  ;;  %v276_v4 = vmul.f32 %v271_v60, %v208_v21  ;;  %v277_v5 = vmul.f32 %v275_v61, %v208_v21  ;;  %v245_v6 = vrot.slane %v184_v35, %v244_v39 }
 0x163   :  { %v221_v8 = vadd.f32 %v219_v56, %v205_v62  ;;  %v288_v9 = vmul.f32 %v283_v0, %v224_v44  ;;  %v289_v10 = vmul.f32 %v287_v1, %v224_v44  ;;  %v249_v12 = vrot.slane %v185_v37, %v244_v39 }
 0x164   :  { %v236_v11 = vadd.f32 %v234_v53, %v220_v3  ;;  %v278_v13 = vadd.f32 %v276_v4, %v266_v59  ;;  %v279_v14 = vadd.f32 %v277_v5, %v267_v63  ;;  %v295_v15 = vrot.slane %v184_v35, %v294_v40 }
 0x165   :  { %v237_v16 = vadd.f32 %v235_v57, %v221_v8  ;;  %v299_v17 = vrot.slane %v185_v37, %v294_v40  ;;  %v250_v19 = vmul.f32 %v245_v6, %v240_v7  ;;  %v251_v2 = vmul.f32 %v249_v12, %v240_v7 }
 0x166   :  { %v290_v23 = vadd.f32 %v288_v9, %v278_v13  ;;  %v291_v24 = vadd.f32 %v289_v10, %v279_v14  ;;  %v300_v25 = vmul.f32 %v295_v15, %v240_v7 }
 0x167   :  { %v252_v21 = vadd.f32 %v250_v19, %v236_v11  ;;  %v253_v26 = vadd.f32 %v251_v2, %v237_v16  ;;  %v301_v27 = vmul.f32 %v299_v17, %v240_v7 }
 0x168   :  { %v302_v28 = vadd.f32 %v300_v25, %v290_v23 }
 0x169   :  { %254 = vst [vmem:[#allocation7] sm:$0xff] %v252_v21  ;;  %255 = vst [vmem:[#allocation7 + $0x8] sm:$0xff] %v253_v26  ;;  %v303_v18 = vadd.f32 %v301_v27, %v291_v24 }
 0x16a   :  { %304 = vst [vmem:[#allocation7 + $0x10] sm:$0xff] %v302_v28 }
 0x16b   :  { %305 = vst [vmem:[#allocation7 + $0x18] sm:$0xff] %v303_v18 }
 0x16c   :  { %415 = shalt.err (!%p412_p6)
}
 0x16d   :  { %s416_s12 = scalar_lea.hbm %s580_s2, 512 }
 0x16e   :  { %p417_p7 = scmp.ne.s32.totalorder %s580_s2, %s416_s12  ;;  %p420_p8 = scmp.lt.u32.totalorder %s416_s12, %s580_s2 }
 0x170   :  { %p422_p9 = pnand %p420_p8, %p417_p7 }
 0x172   :  { %425 = shalt.err (!%p422_p9)
}
 0x173   :  { %s453_s17 = smov 256  }
 0x174   :  { %317 = dma.vmem_to_hbm [thread:$0]  %s312_s8, 512, %s580_s2, [#allocation4], %s453_s17, %s453_s17, %s449_s6  }
 0x175   :  { %430 = dma.done.wait [#allocation4], 512  }
 0x176   :  { %431 = vsyncadd [#allocation4], 4294966784 }
 0x177   :  { %321 = vsyncpa [#allocation3], 1 }
 0x178   :  { %322 = vsyncpa [#allocation6], 1 }
 0x179   :  { %323 = vsyncpa [#allocation4], 1 }

</bundles_post_ra>
